<compile_context>
chip_gen: v7x
topology: tpu7x:2x2x1
jax: 0.10.0
libtpu: 0.0.40
codegen_flags: <defaults>
</compile_context>

<pallas_src>
import functools

import jax
import jax.numpy as jnp
from jax.experimental import pallas as pl
from jax.experimental.pallas import tpu as pltpu


def _round_up(v, m):
    return ((v + m - 1) // m) * m


def _eta_kernel(x_ref, ht_ref, o_ref, *, y_dim):
    """One batch tile of OpFixEta.forward.

    x_ref:  (tb, x_dim)    batch tile of states
    ht_ref: (x_dim, y_dim) pre-transposed observation operator (grid-invariant)
    o_ref:  (tb, eta_dim)  output tile at its true eta width
    """
    # op_obs(x) on the MXU; H already transposed in the wrapper so the
    # contraction dim sits on RHS sublanes (no in-kernel XLU transpose).
    y = jnp.dot(x_ref[...], ht_ref[...], preferred_element_type=jnp.float32)

    # torch.cat((op_obs(x), lbda.repeat(B, 1)), 1): lbda is an unparameterized
    # zeros constant, so the tail columns are one constant slice store.
    o_ref[:, :y_dim] = y.astype(o_ref.dtype)
    tail = o_ref.shape[1] - y_dim
    if tail > 0:  # static
        o_ref[:, y_dim:] = jnp.zeros((o_ref.shape[0], tail), dtype=o_ref.dtype)


def _fused_small(x, h_w, eta_dim):
    """Tiny-batch path: let XLA fuse matmul + zero-concat (no kernel launch)."""
    B = x.shape[0]
    y_dim = h_w.shape[0]
    y = jnp.dot(x, h_w.T, preferred_element_type=jnp.float32).astype(x.dtype)
    tail = jnp.zeros((B, eta_dim - y_dim), dtype=x.dtype)
    return jnp.concatenate([y, tail], axis=1)


def op_fix_eta_forward(x, h_w, eta_dim, *, max_tb=4096, min_steps=8,
                       force_pallas=False):
    """OpFixEta.forward.

    x:       (B, x_dim) float32 batch of states
    h_w:     (y_dim, x_dim) float32 observation operator weight (Linear-style)
    eta_dim: total eta dimension (>= y_dim); lbda = zeros(eta_dim - y_dim)
    returns  (B, eta_dim) float32
    """
    B, x_dim = x.shape
    y_dim = h_w.shape[0]
    assert eta_dim >= y_dim

    # Below ~one pipeline step of work the Pallas launch overhead dominates:
    # fall back to plain jnp and let XLA fuse it into the surrounding graph.
    if not force_pallas and B < 4096:
        return _fused_small(x, h_w, eta_dim)

    # Pre-transpose H once outside the kernel (constant-folded for a fixed
    # weight); the kernel contracts without any XLU transpose.
    h_t = h_w.T  # (x_dim, y_dim)

    # Batch tile: multiple of 8, capped at max_tb, chosen so the grid has
    # ~min_steps steps (>= several steps per TC on v7x for megacore sharding
    # and DMA/compute overlap). The ragged last block is masked by Pallas, so
    # no wrapper-side padding of x is needed.
    tb = max(8, min(max_tb, _round_up(pl.cdiv(B, min_steps), 8)))
    grid = (pl.cdiv(B, tb),)

    cost = pl.CostEstimate(
        flops=2 * B * x_dim * y_dim,
        transcendentals=0,
        bytes_accessed=4 * (B * x_dim + x_dim * y_dim + B * eta_dim),
    )

    out = pl.pallas_call(
        functools.partial(_eta_kernel, y_dim=y_dim),
        out_shape=jax.ShapeDtypeStruct((B, eta_dim), x.dtype),
        grid=grid,
        in_specs=[
            pl.BlockSpec((tb, x_dim), lambda i: (i, 0)),     # x batch tile
            pl.BlockSpec((x_dim, y_dim), lambda i: (0, 0)),  # H^T, grid-invariant
        ],
        out_specs=pl.BlockSpec((tb, eta_dim), lambda i: (i, 0)),
        compiler_params=pltpu.CompilerParams(
            dimension_semantics=("parallel",),  # shards batch tiles across TCs
        ),
        cost_estimate=cost,
    )(x, h_t)

    return out


def _reference(x, h_w, eta_dim):
    B = x.shape[0]
    y_dim = h_w.shape[0]
    lbda = jnp.zeros((eta_dim - y_dim,), dtype=x.dtype)
    return jnp.concatenate(
        [x @ h_w.T, jnp.broadcast_to(lbda[None, :], (B, eta_dim - y_dim))],
        axis=1)


if __name__ == "__main__":
    # Shapes consistent with the module: B=8, x_dim=32, y_dim=16, eta_dim=48
    # (lbda has shape (eta_dim - y_dim,) = (32,), all zeros).
    B, x_dim, y_dim, eta_dim = 8, 32, 16, 48

    key = jax.random.PRNGKey(0)
    kx, kh, kx2 = jax.random.split(key, 3)

    x = jax.random.normal(kx, (B, x_dim), dtype=jnp.float32)
    h_w = jax.random.normal(kh, (y_dim, x_dim), dtype=jnp.float32) * 0.1

    # Single-tile Pallas path.
    out = jax.block_until_ready(
        op_fix_eta_forward(x, h_w, eta_dim, force_pallas=True))
    ref = _reference(x, h_w, eta_dim)
    assert out.shape == (B, eta_dim)
    assert jnp.allclose(out, ref, atol=1e-5, rtol=1e-5)

    # Multi-step grid + ragged last batch block (1000 rows -> tb=128, 8 steps,
    # last block has 104 valid rows).
    B2 = 1000
    x2 = jax.random.normal(kx2, (B2, x_dim), dtype=jnp.float32)
    out2 = jax.block_until_ready(
        op_fix_eta_forward(x2, h_w, eta_dim, force_pallas=True))
    ref2 = _reference(x2, h_w, eta_dim)
    assert out2.shape == (B2, eta_dim)
    assert jnp.allclose(out2, ref2, atol=1e-5, rtol=1e-5)

    # Small-batch dispatch path (XLA fusion fallback) for completeness.
    out3 = jax.block_until_ready(op_fix_eta_forward(x, h_w, eta_dim))
    assert jnp.allclose(out3, ref, atol=1e-5, rtol=1e-5)

    print("KERNEL_OK")
</pallas_src>

<mosaic_0001>
module attributes {stable_mosaic.version = 11 : i64} {
  func.func @_eta_kernel(%arg0: i32, %arg1: memref<8x32xf32, #tpu.memory_space<vmem>>, %arg2: memref<32x16xf32, #tpu.memory_space<vmem>>, %arg3: memref<8x48xf32, #tpu.memory_space<vmem>>) attributes {dimension_semantics = [#tpu.dimension_semantics<parallel>], iteration_bounds = array<i64: 1>, scalar_prefetch = 0 : i64, scratch_operands = 0 : i64, tpu.core_type = #tpu.core_type<tc>, window_params = [{transform_indices = @transform_0, window_bounds = array<i64: 8, 32>}, {pipeline_mode = #tpu.pipeline_mode<synchronous>, transform_indices = @transform_1, window_bounds = array<i64: 32, 16>}, {transform_indices = @transform_2, window_bounds = array<i64: 8, 48>}]} {
    %c0 = arith.constant 0 : index
    %c0_0 = arith.constant 0 : index
    %0 = vector.load %arg1[%c0, %c0_0] : memref<8x32xf32, #tpu.memory_space<vmem>>, vector<8x32xf32>
    %c0_1 = arith.constant 0 : index
    %c0_2 = arith.constant 0 : index
    %1 = vector.load %arg2[%c0_1, %c0_2] : memref<32x16xf32, #tpu.memory_space<vmem>>, vector<32x16xf32>
    %cst = arith.constant dense<0.000000e+00> : vector<8x16xf32>
    %2 = tpu.matmul %0, %1, %cst {dimension_numbers = #tpu.dot_dimension_numbers<[1], [0], [0], [1], [0, 0, 1, 1], [], []>} : vector<8x32xf32>, vector<32x16xf32>, vector<8x16xf32> -> vector<8x16xf32>
    %c0_3 = arith.constant 0 : index
    %c0_4 = arith.constant 0 : index
    %3 = vector.load %arg3[%c0_3, %c0_4] : memref<8x48xf32, #tpu.memory_space<vmem>>, vector<8x16xf32>
    tpu.vector_store %arg3[%c0_3, %c0_4], %2 {strides = array<i32>} : memref<8x48xf32, #tpu.memory_space<vmem>>, vector<8x16xf32>,
    %cst_5 = arith.constant 0.000000e+00 : f32
    %4 = vector.broadcast %cst_5 : f32 to vector<8x32xf32>
    %c0_6 = arith.constant 0 : index
    %c16 = arith.constant 16 : index
    %5 = vector.load %arg3[%c0_6, %c16] : memref<8x48xf32, #tpu.memory_space<vmem>>, vector<8x32xf32>
    tpu.vector_store %arg3[%c0_6, %c16], %4 {strides = array<i32>} : memref<8x48xf32, #tpu.memory_space<vmem>>, vector<8x32xf32>,
    return
  }
  func.func @transform_0(%arg0: i32) -> (i32, i32) {
    %c0_i32 = arith.constant 0 : i32
    %c0_i32_0 = arith.constant 0 : i32
    return %arg0, %c0_i32 : i32, i32
  }
  func.func @transform_1(%arg0: i32) -> (i32, i32) {
    %c0_i32 = arith.constant 0 : i32
    %c0_i32_0 = arith.constant 0 : i32
    %c0_i32_1 = arith.constant 0 : i32
    return %c0_i32, %c0_i32_0 : i32, i32
  }
  func.func @transform_2(%arg0: i32) -> (i32, i32) {
    %c0_i32 = arith.constant 0 : i32
    %c0_i32_0 = arith.constant 0 : i32
    return %arg0, %c0_i32 : i32, i32
  }
}

</mosaic_0001>

<bundles_post_ra>
// kernel: tpu_custom_call.1
= control target key start
LH: loop header
LB: loop body
LE: loop exit
PB: predicated region body
PF: predicated region fallthrough
CT: control target
= control target key end

     0   :  { %v160_v3 = vmov 0.0|0.0   ;;  %vm161_vm0 = vmmov 0   ;;  %v162_v6 = vmov 0.0   ;;  %s206_s0 = inlined_call_operand.vmem [shape: f32[8,32], index: 0, kind: input, shape index: {}]   ;;  %s207_s1 = inlined_call_operand.vmem [shape: f32[32,16], index: 1, kind: input, shape index: {}]   ;;  %s208_s2 = inlined_call_operand.hbm [shape: f32[8,48], index: 2, kind: output, shape index: {}]  }
   0x1   :  { %v13_v0 = vld [vmem:[%s207_s1] sm:$0xff]  ;;  %v14_v1 = vld [vmem:[%s207_s1 + $0x8] sm:$0xff]  ;;  %v15_v2 = vld [vmem:[%s207_s1 + $0x10] sm:$0xff]  ;;  %126 = vmatprep.subr.bf16.mxu0 %v160_v3  ;;  %123 = vmatprep.mubr.msk.f32.mxu0 %vm161_vm0, %v162_v6 }
   0x2   :  { %v127_v4 = vpack.c.bf16 %v14_v1, %v13_v0  ;;  %v16_v5 = vld [vmem:[%s207_s1 + $0x18] sm:$0xff] }
   0x3   :  { %7 = vsyncpa [#allocation3], 0  ;;  %v130_v7 = vpack.c.bf16 %v16_v5, %v15_v2  ;;  %v12_v8 = vld [vmem:[%s206_s0] sm:$0xff]  ;;  %vm17_vm1 = vcmask 261120   ;;  %s163_s19 = smov [#allocation2]   ;;  %vm91_vm2 = vcmask 130048  }
   0x4   :  { %128 = vmatpush3.bf16.msra.mxu0 %v127_v4  ;;  %s101_s20 = sshll.u32 %s163_s19, 4  ;;  %vm93_vm3 = vcmask 392320   ;;  %s102_s20 = int_to_ptr.vmem [resolvable:$true] %s101_s20 }
   0x5   :  { %129 = vmatprep.subr.bf16.mxu0 %v160_v3  ;;  %s136_s1 = scalar_lea.vmem %s102_s20, 128  ;;  %p141_p1 = scmp.lt.s32.totalorder %s102_s20, %s102_s20 }
   0x6   :  { %p137_p0 = scmp.ne.s32.totalorder %s102_s20, %s136_s1  ;;  %p142_p2 = scmp.lt.s32.totalorder %s136_s1, %s136_s1 }
   0x8   :  { %131 = vmatpush3.bf16.msra.mxu0 %v130_v7  ;;  %p143_p3 = por %p142_p2, %p141_p1 }
   0xa   :  { %p144_p4 = pnand %p143_p3, %p137_p0 }
   0xb   :  { %124 = vmatmul.mubr.msk.f32.vlgmr.msra.gmra.mrb[0].mxu0 %vm17_vm1, %v12_v8 }
  0xde   :  { %v87_v9 = vpop.f32.mrb[0].mxu0 }
  0xdf   :  { %92 = vst.msk [vmem:[#allocation2] sm:$0xff] %vm91_vm2, %v87_v9  ;;  %v125_v10 = vpop.f32.mrb[1].mxu0 }
  0xe0   :  { %94 = vst.msk [vmem:[#allocation2] sm:$0xff] %vm93_vm3, %v162_v6 }
  0xe1   :  { %147 = shalt.err (!%p144_p4)
}
  0xe2   :  { %s148_s22 = scalar_lea.hbm %s208_s2, 128 }
  0xe3   :  { %p149_p5 = scmp.ne.s32.totalorder %s208_s2, %s148_s22  ;;  %p152_p6 = scmp.lt.u32.totalorder %s148_s22, %s208_s2 }
  0xe5   :  { %p154_p7 = pnand %p152_p6, %p149_p5 }
  0xe7   :  { %157 = shalt.err (!%p154_p7)
}
  0xe8   :  { %104 = dma.vmem_to_hbm [thread:$0]  %s102_s20, 128, %s208_s2, [#allocation3]  }
  0xe9   :  { %158 = dma.done.wait [#allocation3], 128  }
  0xea   :  { %159 = vsyncadd [#allocation3], 4294967168 }
  0xeb   :  { %108 = vsyncpa [#allocation3], 1 }

</bundles_post_ra>
